<compile_context>
chip_gen: v6e
topology: v6e:2x2x1
jax: 0.10.0
libtpu: 0.0.40
codegen_flags: <defaults>
</compile_context>

<pallas_src>
import functools

import numpy as np
import jax
import jax.numpy as jnp
from jax.experimental import pallas as pl
from jax.experimental.pallas import tpu as pltpu

_LANE = 128
_BIAS_ROWS = 16          # bias block height; keeps every row offset 16-aligned
_NEG_MASK = -1e30        # bias for padded action lanes -> exp underflows to 0


def _round_up(x, m):
    return ((x + m - 1) // m) * m


def _policy_kernel(layer_meta, out_width, x_ref, params_ref, out_ref):
    """One batch tile: full MLP forward + softmax/log_softmax.

    layer_meta: static tuple of (row_offset, padded_in, padded_out) per layer.
    params_ref: packed (rows, width) array holding every layer's weight and a
                bias row; static slices below are zero-cost views.
    out_ref:    lane-dense slab [probs | log_probs], each out_width lanes wide.
    """
    x = x_ref[...].astype(jnp.float32)
    n = len(layer_meta)
    for i, (roff, pin, pout) in enumerate(layer_meta):
        w = params_ref[roff:roff + pin, 0:pout]
        b = params_ref[roff + pin:roff + pin + 1, 0:pout].astype(jnp.float32)
        x = jnp.dot(x.astype(w.dtype), w, preferred_element_type=jnp.float32) + b
        if i < n - 1:                       # ReLU on all but the output layer
            x = jnp.maximum(x, 0.0)

    # Max-stabilized softmax / log_softmax over the action (lane) axis.
    # Padded action lanes carry a -1e30 bias -> exp underflows to exactly 0,
    # so the padded lanes contribute nothing to the sum.
    m = jnp.max(x, axis=1, keepdims=True)
    z = x - m
    e = jnp.exp(z)
    s = jnp.sum(e, axis=1, keepdims=True)
    logp = z - jnp.log(s)
    probs = jnp.exp(logp)                   # reuse EUP exp; avoids the divide

    out_ref[:, 0:out_width] = probs
    out_ref[:, out_width:2 * out_width] = logp


def pack_params(params, state_dim, dtype=jnp.float32):
    """Pack [(W, b), ...] (W:(in,out), b:(out,)) into one padded array.

    Layout (row-major): per layer -> padded weight block (pin x width), then a
    _BIAS_ROWS-high bias block whose first row holds the bias.  All widths are
    padded to multiples of 128 lanes; the final layer's padded action lanes get
    a -1e30 bias so softmax ignores them.
    """
    dims = [int(state_dim)] + [int(w.shape[1]) for w, _ in params]
    pdims = [_round_up(d, _LANE) for d in dims]
    width = max(pdims[1:])
    n = len(params)
    rows = sum(pdims[:-1]) + _BIAS_ROWS * n

    packed = np.zeros((rows, width), np.float32)
    meta = []
    off = 0
    for i, (w, b) in enumerate(params):
        w = np.asarray(w, np.float32)
        b = np.asarray(b, np.float32)
        pin, pout = pdims[i], pdims[i + 1]
        din, dout = w.shape
        packed[off:off + din, :dout] = w
        packed[off + pin, :dout] = b
        if i == n - 1 and dout < pout:
            packed[off + pin, dout:pout] = _NEG_MASK   # mask padded action lanes
        meta.append((off, pin, pout))
        off += pin + _BIAS_ROWS

    return jnp.asarray(packed, dtype=dtype), tuple(meta), tuple(pdims)


def ppo_policy_forward(s, packed, meta, pdims, action_dim, batch_tile=None):
    """Returns (probs, log_probs), each (batch, action_dim) float32."""
    batch, sdim = s.shape
    in_width = pdims[0]
    out_width = pdims[-1]

    if batch_tile is None:
        batch_tile = min(512, _round_up(batch, 8))   # big tiles when batch allows
    tb = batch_tile
    batch_pad = _round_up(batch, tb)

    # Pad the state input to (batch_pad, in_width); padded rows/lanes are zero.
    x = jnp.zeros((batch_pad, in_width), jnp.float32)
    x = x.at[:batch, :sdim].set(s.astype(jnp.float32))

    n_rows, width = packed.shape
    grid = (batch_pad // tb,)
    kernel = functools.partial(_policy_kernel, meta, out_width)

    out = pl.pallas_call(
        kernel,
        out_shape=jax.ShapeDtypeStruct((batch_pad, 2 * out_width), jnp.float32),
        grid=grid,
        in_specs=[
            # Stream batch tiles (double-buffered HBM<->VMEM pipelining).
            pl.BlockSpec((tb, in_width), lambda i: (i, 0)),
            # Packed params: same block every step -> stays VMEM-resident.
            pl.BlockSpec((n_rows, width), lambda i: (0, 0)),
        ],
        out_specs=pl.BlockSpec((tb, 2 * out_width), lambda i: (i, 0)),
        compiler_params=pltpu.CompilerParams(
            dimension_semantics=("parallel",),     # shard batch tiles across TCs
            vmem_limit_bytes=32 * 1024 * 1024,     # safe under v7x's 64 MiB VMEM
        ),
    )(x, packed)

    probs = out[:batch, :action_dim]
    log_probs = out[:batch, out_width:out_width + action_dim]
    return probs, log_probs


def init_params(key, state_dim, action_dim, hidden_layers):
    """Deterministic synthetic init (uniform, PyTorch-Linear-like fan_in bound)."""
    dims = [state_dim] + list(hidden_layers) + [action_dim]
    params = []
    for i in range(len(dims) - 1):
        key, kw, kb = jax.random.split(key, 3)
        bound = 1.0 / jnp.sqrt(dims[i])
        w = jax.random.uniform(kw, (dims[i], dims[i + 1]), jnp.float32, -bound, bound)
        b = jax.random.uniform(kb, (dims[i + 1],), jnp.float32, -bound, bound)
        params.append((w, b))
    return params


def reference_forward(s, params):
    x = s.astype(jnp.float32)
    n = len(params)
    for i, (w, b) in enumerate(params):
        x = x @ w + b
        if i < n - 1:
            x = jnp.maximum(x, 0.0)
    return jax.nn.softmax(x, axis=1), jax.nn.log_softmax(x, axis=1)


if __name__ == "__main__":
    key = jax.random.PRNGKey(0)
    batch, state_dim, action_dim = 8, 16, 4
    hidden_layers = [32, 32]

    key, k_s = jax.random.split(key)
    s = jax.random.normal(k_s, (batch, state_dim), jnp.float32)
    params = init_params(key, state_dim, action_dim, hidden_layers)
    ref_probs, ref_logp = reference_forward(s, params)

    # --- f32 path (exact check against the reference) ---
    packed32, meta32, pdims32 = pack_params(params, state_dim, dtype=jnp.float32)
    probs, log_probs = ppo_policy_forward(s, packed32, meta32, pdims32, action_dim)
    probs = jax.block_until_ready(probs)
    log_probs = jax.block_until_ready(log_probs)
    assert jnp.allclose(probs, ref_probs, atol=1e-5, rtol=1e-5)
    assert jnp.allclose(log_probs, ref_logp, atol=1e-5, rtol=1e-5)
    assert jnp.allclose(jnp.sum(probs, axis=1), 1.0, atol=1e-5)

    # --- bf16 MXU-operand path (v6e/v7x): same kernel, looser tolerance ---
    packed16, meta16, pdims16 = pack_params(params, state_dim, dtype=jnp.bfloat16)
    probs16, logp16 = ppo_policy_forward(s, packed16, meta16, pdims16, action_dim)
    probs16 = jax.block_until_ready(probs16)
    logp16 = jax.block_until_ready(logp16)
    assert jnp.allclose(probs16, ref_probs, atol=5e-2, rtol=5e-2)
    assert jnp.allclose(jnp.sum(probs16, axis=1), 1.0, atol=1e-2)

    print("KERNEL_OK")
</pallas_src>

<mosaic_0001>
module attributes {stable_mosaic.version = 11 : i64} {
  func.func @_policy_kernel(%arg0: i32, %arg1: memref<8x128xf32, #tpu.memory_space<vmem>>, %arg2: memref<432x128xf32, #tpu.memory_space<vmem>>, %arg3: memref<8x256xf32, #tpu.memory_space<vmem>>) attributes {dimension_semantics = [#tpu.dimension_semantics<parallel>], iteration_bounds = array<i64: 1>, scalar_prefetch = 0 : i64, scratch_operands = 0 : i64, tpu.core_type = #tpu.core_type<tc>, window_params = [{transform_indices = @transform_0, window_bounds = array<i64: 8, 128>}, {pipeline_mode = #tpu.pipeline_mode<synchronous>, transform_indices = @transform_1, window_bounds = array<i64: 432, 128>}, {transform_indices = @transform_2, window_bounds = array<i64: 8, 256>}]} {
    %c0 = arith.constant 0 : index
    %c0_0 = arith.constant 0 : index
    %0 = vector.load %arg1[%c0, %c0_0] : memref<8x128xf32, #tpu.memory_space<vmem>>, vector<8x128xf32>
    %c0_1 = arith.constant 0 : index
    %c0_2 = arith.constant 0 : index
    %1 = vector.load %arg2[%c0_1, %c0_2] : memref<432x128xf32, #tpu.memory_space<vmem>>, vector<128x128xf32>
    %c128 = arith.constant 128 : index
    %c0_3 = arith.constant 0 : index
    %2 = vector.load %arg2[%c128, %c0_3] : memref<432x128xf32, #tpu.memory_space<vmem>>, vector<1x128xf32>
    %cst = arith.constant dense<0.000000e+00> : vector<8x128xf32>
    %3 = tpu.matmul %0, %1, %cst {dimension_numbers = #tpu.dot_dimension_numbers<[1], [0], [0], [1], [0, 0, 1, 1], [], []>} : vector<8x128xf32>, vector<128x128xf32>, vector<8x128xf32> -> vector<8x128xf32>
    %4 = vector.broadcast %2 : vector<1x128xf32> to vector<8x128xf32>
    %5 = arith.addf %3, %4 : vector<8x128xf32>
    %cst_4 = arith.constant 0.000000e+00 : f32
    %6 = vector.broadcast %cst_4 : f32 to vector<8x128xf32>
    %7 = arith.maximumf %5, %6 : vector<8x128xf32>
    %c144 = arith.constant 144 : index
    %c0_5 = arith.constant 0 : index
    %8 = vector.load %arg2[%c144, %c0_5] : memref<432x128xf32, #tpu.memory_space<vmem>>, vector<128x128xf32>
    %c272 = arith.constant 272 : index
    %c0_6 = arith.constant 0 : index
    %9 = vector.load %arg2[%c272, %c0_6] : memref<432x128xf32, #tpu.memory_space<vmem>>, vector<1x128xf32>
    %cst_7 = arith.constant dense<0.000000e+00> : vector<8x128xf32>
    %10 = tpu.matmul %7, %8, %cst_7 {dimension_numbers = #tpu.dot_dimension_numbers<[1], [0], [0], [1], [0, 0, 1, 1], [], []>} : vector<8x128xf32>, vector<128x128xf32>, vector<8x128xf32> -> vector<8x128xf32>
    %11 = vector.broadcast %9 : vector<1x128xf32> to vector<8x128xf32>
    %12 = arith.addf %10, %11 : vector<8x128xf32>
    %cst_8 = arith.constant 0.000000e+00 : f32
    %13 = vector.broadcast %cst_8 : f32 to vector<8x128xf32>
    %14 = arith.maximumf %12, %13 : vector<8x128xf32>
    %c288 = arith.constant 288 : index
    %c0_9 = arith.constant 0 : index
    %15 = vector.load %arg2[%c288, %c0_9] : memref<432x128xf32, #tpu.memory_space<vmem>>, vector<128x128xf32>
    %c416 = arith.constant 416 : index
    %c0_10 = arith.constant 0 : index
    %16 = vector.load %arg2[%c416, %c0_10] : memref<432x128xf32, #tpu.memory_space<vmem>>, vector<1x128xf32>
    %cst_11 = arith.constant dense<0.000000e+00> : vector<8x128xf32>
    %17 = tpu.matmul %14, %15, %cst_11 {dimension_numbers = #tpu.dot_dimension_numbers<[1], [0], [0], [1], [0, 0, 1, 1], [], []>} : vector<8x128xf32>, vector<128x128xf32>, vector<8x128xf32> -> vector<8x128xf32>
    %18 = vector.broadcast %16 : vector<1x128xf32> to vector<8x128xf32>
    %19 = arith.addf %17, %18 : vector<8x128xf32>
    %cst_12 = arith.constant dense<0xFF800000> : vector<8xf32>
    %20 = vector.multi_reduction <maximumf>, %19, %cst_12 [1] : vector<8x128xf32> to vector<8xf32>
    %21 = vector.shape_cast %20 : vector<8xf32> to vector<8x1xf32>
    %22 = vector.broadcast %21 : vector<8x1xf32> to vector<8x128xf32>
    %23 = arith.subf %19, %22 : vector<8x128xf32>
    %24 = math.exp %23 : vector<8x128xf32>
    %cst_13 = arith.constant dense<0.000000e+00> : vector<8xf32>
    %25 = vector.multi_reduction <add>, %24, %cst_13 [1] : vector<8x128xf32> to vector<8xf32>
    %26 = vector.shape_cast %25 : vector<8xf32> to vector<8x1xf32>
    %27 = math.log %26 : vector<8x1xf32>
    %28 = vector.broadcast %27 : vector<8x1xf32> to vector<8x128xf32>
    %29 = arith.subf %23, %28 : vector<8x128xf32>
    %30 = math.exp %29 : vector<8x128xf32>
    %c0_14 = arith.constant 0 : index
    %c0_15 = arith.constant 0 : index
    %31 = vector.load %arg3[%c0_14, %c0_15] : memref<8x256xf32, #tpu.memory_space<vmem>>, vector<8x128xf32>
    tpu.vector_store %arg3[%c0_14, %c0_15], %30 {strides = array<i32>} : memref<8x256xf32, #tpu.memory_space<vmem>>, vector<8x128xf32>,
    %c0_16 = arith.constant 0 : index
    %c128_17 = arith.constant 128 : index
    %32 = vector.load %arg3[%c0_16, %c128_17] : memref<8x256xf32, #tpu.memory_space<vmem>>, vector<8x128xf32>
    tpu.vector_store %arg3[%c0_16, %c128_17], %29 {strides = array<i32>} : memref<8x256xf32, #tpu.memory_space<vmem>>, vector<8x128xf32>,
    return
  }
  func.func @transform_0(%arg0: i32) -> (i32, i32) {
    %c0_i32 = arith.constant 0 : i32
    %c0_i32_0 = arith.constant 0 : i32
    return %arg0, %c0_i32 : i32, i32
  }
  func.func @transform_1(%arg0: i32) -> (i32, i32) {
    %c0_i32 = arith.constant 0 : i32
    %c0_i32_0 = arith.constant 0 : i32
    %c0_i32_1 = arith.constant 0 : i32
    return %c0_i32, %c0_i32_0 : i32, i32
  }
  func.func @transform_2(%arg0: i32) -> (i32, i32) {
    %c0_i32 = arith.constant 0 : i32
    %c0_i32_0 = arith.constant 0 : i32
    return %arg0, %c0_i32 : i32, i32
  }
}

</mosaic_0001>

<bundles_post_ra>
// kernel: tpu_custom_call.1
= control target key start
LH: loop header
LB: loop body
LE: loop exit
PB: predicated region body
PF: predicated region fallthrough
CT: control target
= control target key end

     0   :  { %7 = vsyncpa [#allocation3], 0  ;;  %s667_s0 = inlined_call_operand.hbm [shape: f32[8,128], index: 0, kind: input, shape index: {}]   ;;  %s668_s1 = inlined_call_operand.hbm [shape: f32[432,128], index: 1, kind: input, shape index: {}]   ;;  %s669_s2 = inlined_call_operand.hbm [shape: f32[8,256], index: 2, kind: output, shape index: {}]  }
   0x1   :  { %8 = vsyncpa [#allocation6], 0 }
   0x2   :  { %9 = vsyncpa [#allocation4], 0  ;;  %s582_s9 = smov [#allocation2]   ;;  %s583_s11 = smov [#allocation5]  }
   0x3   :  { %s16_s10 = sshll.u32 %s582_s9, 4  ;;  %s25_s12 = sshll.u32 %s583_s11, 4  ;;  %s17_s10 = int_to_ptr.vmem [resolvable:$true] %s16_s10  ;;  %s26_s12 = int_to_ptr.vmem [resolvable:$true] %s25_s12 }
   0x4   :  { %s524_s13 = scalar_lea.vmem %s17_s10, 128  ;;  %p529_p1 = scmp.lt.s32.totalorder %s17_s10, %s17_s10 }
   0x5   :  { %p525_p0 = scmp.ne.s32.totalorder %s17_s10, %s524_s13  ;;  %p530_p2 = scmp.lt.s32.totalorder %s524_s13, %s524_s13 }
   0x7   :  { %p531_p3 = por %p530_p2, %p529_p1 }
   0x9   :  { %p532_p4 = pnand %p531_p3, %p525_p0 }
   0xb   :  { %535 = shalt.err (!%p532_p4)
}
   0xc   :  { %19 = dma.hbm_to_vmem [thread:$0]  %s667_s0, 128, %s17_s10, [#allocation3]  }
   0xd   :  { %s544_s16 = scalar_lea.vmem %s26_s12, 6912  ;;  %p549_p6 = scmp.lt.s32.totalorder %s26_s12, %s26_s12 }
   0xe   :  { %p545_p5 = scmp.ne.s32.totalorder %s26_s12, %s544_s16  ;;  %p550_p7 = scmp.lt.s32.totalorder %s544_s16, %s544_s16 }
  0x10   :  { %p551_p8 = por %p550_p7, %p549_p6 }
  0x12   :  { %p552_p9 = pnand %p551_p8, %p545_p5 }
  0x14   :  { %555 = shalt.err (!%p552_p9)
}
  0x15   :  { %s584_s17 = smov 128   ;;  %s585_s18 = smov 8  }
  0x16   :  { %31 = dma.hbm_to_vmem [thread:$0]  %s668_s1, 6912, %s26_s12, [#allocation6], %s584_s17, %s584_s17, %s585_s18  }
  0x17   :  { %576 = dma.done.wait [#allocation3], 128  }
  0x18   :  { %577 = vsyncadd [#allocation3], 4294967168 }
  0x19   :  { %578 = dma.done.wait [#allocation6], 6912  }
  0x1a   :  { %579 = vsyncadd [#allocation6], 4294960384  ;;  %v586_v0 = vmov 0.0   ;;  %vm587_vm0 = vmmov 0   ;;  %v54_v1 = vld [vmem:[#allocation5 + $0x78] sm:$0xff]  ;;  %v53_v2 = vld [vmem:[#allocation5 + $0x70] sm:$0xff] }
  0x1b   :  { %398 = vmatprep.subr.mxu0 %v586_v0  ;;  %430 = vmatprep.mubr.msk.f32.mxu0 %vm587_vm0, %v586_v0  ;;  %v52_v3 = vld [vmem:[#allocation5 + $0x68] sm:$0xff]  ;;  %v51_v4 = vld [vmem:[#allocation5 + $0x60] sm:$0xff]  ;;  %v50_v6 = vld [vmem:[#allocation5 + $0x58] sm:$0xff]  ;;  %s588_s0 = smov [#allocation7]  }
  0x1c   :  { %433 = vmatprep.subr.mxu1 %v586_v0  ;;  %465 = vmatprep.mubr.msk.f32.mxu1 %vm587_vm0, %v586_v0  ;;  %v146_v5 = vld [vmem:[#allocation5 + $0x108] sm:$0xff]  ;;  %v145_v7 = vld [vmem:[#allocation5 + $0x100] sm:$0xff]  ;;  %v144_v8 = vld [vmem:[#allocation5 + $0xf8] sm:$0xff]  ;;  %s334_s1 = sshll.u32 %s588_s0, 4  ;;  %s335_s1 = int_to_ptr.vmem [resolvable:$true] %s334_s1 }
  0x1d   :  { %399 = vmatpush3.msra.mxu0 %v54_v1  ;;  %434 = vmatpush3.msra.mxu1 %v146_v5  ;;  %v49_v9 = vld [vmem:[#allocation5 + $0x50] sm:$0xff]  ;;  %v48_v11 = vld [vmem:[#allocation5 + $0x48] sm:$0xff]  ;;  %v47_v13 = vld [vmem:[#allocation5 + $0x40] sm:$0xff]  ;;  %s556_s21 = scalar_lea.vmem %s335_s1, 256  ;;  %p561_p11 = scmp.lt.s32.totalorder %s335_s1, %s335_s1 }
  0x1e   :  { %400 = vmatprep.subr.mxu0 %v586_v0  ;;  %435 = vmatprep.subr.mxu1 %v586_v0  ;;  %v143_v10 = vld [vmem:[#allocation5 + $0xf0] sm:$0xff]  ;;  %v142_v12 = vld [vmem:[#allocation5 + $0xe8] sm:$0xff]  ;;  %v141_v14 = vld [vmem:[#allocation5 + $0xe0] sm:$0xff]  ;;  %p557_p10 = scmp.ne.s32.totalorder %s335_s1, %s556_s21  ;;  %p562_p12 = scmp.lt.s32.totalorder %s556_s21, %s556_s21 }
  0x1f   :  { %401 = vmatpush3.msra.mxu0 %v53_v2  ;;  %436 = vmatpush3.msra.mxu1 %v145_v7  ;;  %v46_v15 = vld [vmem:[#allocation5 + $0x38] sm:$0xff]  ;;  %v45_v17 = vld [vmem:[#allocation5 + $0x30] sm:$0xff]  ;;  %v44_v19 = vld [vmem:[#allocation5 + $0x28] sm:$0xff] }
  0x20   :  { %402 = vmatprep.subr.mxu0 %v586_v0  ;;  %437 = vmatprep.subr.mxu1 %v586_v0  ;;  %v140_v16 = vld [vmem:[#allocation5 + $0xd8] sm:$0xff]  ;;  %v139_v18 = vld [vmem:[#allocation5 + $0xd0] sm:$0xff]  ;;  %v138_v20 = vld [vmem:[#allocation5 + $0xc8] sm:$0xff]  ;;  %p563_p13 = por %p562_p12, %p561_p11 }
  0x21   :  { %403 = vmatpush3.msra.mxu0 %v52_v3  ;;  %438 = vmatpush3.msra.mxu1 %v144_v8  ;;  %v43_v21 = vld [vmem:[#allocation5 + $0x20] sm:$0xff]  ;;  %v42_v23 = vld [vmem:[#allocation5 + $0x18] sm:$0xff]  ;;  %v41_v25 = vld [vmem:[#allocation5 + $0x10] sm:$0xff] }
  0x22   :  { %404 = vmatprep.subr.mxu0 %v586_v0  ;;  %439 = vmatprep.subr.mxu1 %v586_v0  ;;  %v137_v22 = vld [vmem:[#allocation5 + $0xc0] sm:$0xff]  ;;  %v136_v24 = vld [vmem:[#allocation5 + $0xb8] sm:$0xff]  ;;  %v135_v26 = vld [vmem:[#allocation5 + $0xb0] sm:$0xff]  ;;  %p564_p0 = pnand %p563_p13, %p557_p10 }
  0x23   :  { %405 = vmatpush3.msra.mxu0 %v51_v4  ;;  %440 = vmatpush3.msra.mxu1 %v143_v10  ;;  %v40_v27 = vld [vmem:[#allocation5 + $0x8] sm:$0xff]  ;;  %v39_v29 = vld [vmem:[#allocation5] sm:$0xff]  ;;  %v38_v30 = vld [vmem:[#allocation2] sm:$0xff] }
  0x24   :  { %406 = vmatprep.subr.mxu0 %v586_v0  ;;  %441 = vmatprep.subr.mxu1 %v586_v0  ;;  %v134_v28 = vld [vmem:[#allocation5 + $0xa8] sm:$0xff]  ;;  %v133_v31 = vld [vmem:[#allocation5 + $0xa0] sm:$0xff]  ;;  %v132_v32 = vld [vmem:[#allocation5 + $0x98] sm:$0xff] }
  0x25   :  { %407 = vmatpush3.msra.mxu0 %v50_v6  ;;  %442 = vmatpush3.msra.mxu1 %v142_v12  ;;  %v131_v33 = vld [vmem:[#allocation5 + $0x90] sm:$0xff]  ;;  %v238_v34 = vld [vmem:[#allocation5 + $0x198] sm:$0xff]  ;;  %v236_v36 = vld [vmem:[#allocation5 + $0x188] sm:$0xff] }
  0x26   :  { %408 = vmatprep.subr.mxu0 %v586_v0  ;;  %443 = vmatprep.subr.mxu1 %v586_v0  ;;  %v237_v35 = vld [vmem:[#allocation5 + $0x190] sm:$0xff]  ;;  %v235_v37 = vld [vmem:[#allocation5 + $0x180] sm:$0xff]  ;;  %v234_v38 = vld [vmem:[#allocation5 + $0x178] sm:$0xff] }
  0x27   :  { %409 = vmatpush3.msra.mxu0 %v49_v9  ;;  %444 = vmatpush3.msra.mxu1 %v141_v14  ;;  %v233_v39 = vld [vmem:[#allocation5 + $0x170] sm:$0xff]  ;;  %v232_v40 = vld [vmem:[#allocation5 + $0x168] sm:$0xff]  ;;  %v231_v41 = vld [vmem:[#allocation5 + $0x160] sm:$0xff] }
  0x28   :  { %410 = vmatprep.subr.mxu0 %v586_v0  ;;  %445 = vmatprep.subr.mxu1 %v586_v0  ;;  %v230_v42 = vld [vmem:[#allocation5 + $0x158] sm:$0xff]  ;;  %v229_v43 = vld [vmem:[#allocation5 + $0x150] sm:$0xff]  ;;  %v228_v44 = vld [vmem:[#allocation5 + $0x148] sm:$0xff] }
  0x29   :  { %411 = vmatpush3.msra.mxu0 %v48_v11  ;;  %446 = vmatpush3.msra.mxu1 %v140_v16  ;;  %v227_v45 = vld [vmem:[#allocation5 + $0x140] sm:$0xff]  ;;  %v226_v46 = vld [vmem:[#allocation5 + $0x138] sm:$0xff]  ;;  %v225_v52 = vld [vmem:[#allocation5 + $0x130] sm:$0xff] }
  0x2a   :  { %412 = vmatprep.subr.mxu0 %v586_v0  ;;  %447 = vmatprep.subr.mxu1 %v586_v0  ;;  %v344_v47 = vld [vmem:[#allocation5 + $0x80] ss:$0 sm:$0xff]  ;;  %v224_v53 = vld [vmem:[#allocation5 + $0x128] sm:$0xff]  ;;  %v345_v55 = vld [vmem:[#allocation5 + $0x110] ss:$0 sm:$0xff] }
  0x2b   :  { %413 = vmatpush3.msra.mxu0 %v47_v13  ;;  %448 = vmatpush3.msra.mxu1 %v139_v18  ;;  %v223_v54 = vld [vmem:[#allocation5 + $0x120] sm:$0xff] }
  0x2c   :  { %414 = vmatprep.subr.mxu0 %v586_v0  ;;  %449 = vmatprep.subr.mxu1 %v586_v0  ;;  %v346_v60 = vld [vmem:[#allocation5 + $0x1a0] ss:$0 sm:$0xff] }
  0x2d   :  { %415 = vmatpush3.msra.mxu0 %v46_v15  ;;  %450 = vmatpush3.msra.mxu1 %v138_v20 }
  0x2e   :  { %416 = vmatprep.subr.mxu0 %v586_v0  ;;  %451 = vmatprep.subr.mxu1 %v586_v0 }
  0x2f   :  { %417 = vmatpush3.msra.mxu0 %v45_v17  ;;  %452 = vmatpush3.msra.mxu1 %v137_v22 }
  0x30   :  { %418 = vmatprep.subr.mxu0 %v586_v0  ;;  %453 = vmatprep.subr.mxu1 %v586_v0 }
  0x31   :  { %419 = vmatpush3.msra.mxu0 %v44_v19  ;;  %454 = vmatpush3.msra.mxu1 %v136_v24 }
  0x32   :  { %420 = vmatprep.subr.mxu0 %v586_v0  ;;  %455 = vmatprep.subr.mxu1 %v586_v0 }
  0x33   :  { %421 = vmatpush3.msra.mxu0 %v43_v21  ;;  %456 = vmatpush3.msra.mxu1 %v135_v26 }
  0x34   :  { %422 = vmatprep.subr.mxu0 %v586_v0  ;;  %457 = vmatprep.subr.mxu1 %v586_v0 }
  0x35   :  { %423 = vmatpush3.msra.mxu0 %v42_v23  ;;  %458 = vmatpush3.msra.mxu1 %v134_v28 }
  0x36   :  { %424 = vmatprep.subr.mxu0 %v586_v0  ;;  %459 = vmatprep.subr.mxu1 %v586_v0 }
  0x37   :  { %425 = vmatpush3.msra.mxu0 %v41_v25  ;;  %460 = vmatpush3.msra.mxu1 %v133_v31 }
  0x38   :  { %426 = vmatprep.subr.mxu0 %v586_v0  ;;  %461 = vmatprep.subr.mxu1 %v586_v0 }
  0x39   :  { %427 = vmatpush3.msra.mxu0 %v40_v27  ;;  %462 = vmatpush3.msra.mxu1 %v132_v32 }
  0x3a   :  { %428 = vmatprep.subr.mxu0 %v586_v0  ;;  %463 = vmatprep.subr.mxu1 %v586_v0 }
  0x3b   :  { %429 = vmatpush3.msra.mxu0 %v39_v29  ;;  %464 = vmatpush3.msra.mxu1 %v131_v33 }
  0x3c   :  { %431 = vmatmul.mubr.f32.vlgmr.msra.gmra.mxu0 %v38_v30  ;;  %468 = vmatprep.subr.mxu0 %v586_v0 }
  0x3d   :  { %500 = vmatprep.mubr.msk.f32.mxu0 %vm587_vm0, %v586_v0  ;;  %469 = vmatpush3.msra.mxu0 %v238_v34 }
  0x3e   :  { %470 = vmatprep.subr.mxu0 %v586_v0 }
  0x3f   :  { %471 = vmatpush3.msra.mxu0 %v237_v35 }
  0x40   :  { %472 = vmatprep.subr.mxu0 %v586_v0 }
  0x41   :  { %473 = vmatpush3.msra.mxu0 %v236_v36 }
  0x42   :  { %474 = vmatprep.subr.mxu0 %v586_v0 }
  0x43   :  { %475 = vmatpush3.msra.mxu0 %v235_v37 }
  0x44   :  { %476 = vmatprep.subr.mxu0 %v586_v0 }
  0x45   :  { %477 = vmatpush3.msra.mxu0 %v234_v38 }
  0x46   :  { %478 = vmatprep.subr.mxu0 %v586_v0 }
  0x47   :  { %479 = vmatpush3.msra.mxu0 %v233_v39 }
  0x48   :  { %480 = vmatprep.subr.mxu0 %v586_v0 }
  0x49   :  { %481 = vmatpush3.msra.mxu0 %v232_v40 }
  0x4a   :  { %482 = vmatprep.subr.mxu0 %v586_v0 }
  0x4b   :  { %483 = vmatpush3.msra.mxu0 %v231_v41 }
  0x4c   :  { %484 = vmatprep.subr.mxu0 %v586_v0 }
  0x4d   :  { %485 = vmatpush3.msra.mxu0 %v230_v42 }
  0x4e   :  { %486 = vmatprep.subr.mxu0 %v586_v0 }
  0x4f   :  { %487 = vmatpush3.msra.mxu0 %v229_v43 }
  0x50   :  { %488 = vmatprep.subr.mxu0 %v586_v0 }
  0x51   :  { %489 = vmatpush3.msra.mxu0 %v228_v44 }
  0x52   :  { %490 = vmatprep.subr.mxu0 %v586_v0 }
  0x53   :  { %491 = vmatpush3.msra.mxu0 %v227_v45 }
  0x54   :  { %492 = vmatprep.subr.mxu0 %v586_v0 }
  0x55   :  { %493 = vmatpush3.msra.mxu0 %v226_v46 }
  0x56   :  { %494 = vmatprep.subr.mxu0 %v586_v0 }
  0x57   :  { %495 = vmatpush3.msra.mxu0 %v225_v52 }
  0x58   :  { %496 = vmatprep.subr.mxu0 %v586_v0 }
  0x59   :  { %497 = vmatpush3.msra.mxu0 %v224_v53 }
  0x5a   :  { %498 = vmatprep.subr.mxu0 %v586_v0 }
  0x5b   :  { %499 = vmatpush3.msra.mxu0 %v223_v54 }
  0xfc   :  { %v126_v48 = vpop.f32.mrf.mxu0 }
  0xfd   :  { %v127_v49 = vadd.f32 %v344_v47, %v126_v48 }
  0xfe   :  { %v432_v50 = vpop.f32.mrf.mxu0 }
  0xff   :  { %v130_v51 = vmax.f32 %v127_v49, 0.0 }
 0x101   :  { %466 = vmatmul.mubr.f32.vlgmr.msra.gmra.mxu1 %v130_v51 }
 0x1c1   :  { %v218_v56 = vpop.f32.mrf.mxu1 }
 0x1c2   :  { %v219_v57 = vadd.f32 %v345_v55, %v218_v56 }
 0x1c3   :  { %v467_v58 = vpop.f32.mrf.mxu1 }
 0x1c4   :  { %v222_v59 = vmax.f32 %v219_v57, 0.0 }
 0x1c6   :  { %501 = vmatmul.mubr.f32.vlgmr.msra.gmra.mxu0 %v222_v59 }
 0x286   :  { %v310_v61 = vpop.f32.mrf.mxu0 }
 0x287   :  { %v311_v62 = vadd.f32 %v346_v60, %v310_v61 }
 0x288   :  { %v502_v63 = vpop.f32.mrf.mxu0 }
 0x289   :  { %314 = vmax.xlane.f32.xlu0 %v311_v62 }
 0x312   :  { %v315_v1 = vpop.xlane.xlu0 %314 }
 0x313   :  { %v316_v2 = vsub.f32 %v311_v62, %v315_v1 }
 0x315   :  { %v317_v3 = vmul.f32 1.442695, %v316_v2 }
 0x317   :  { %510 = vpow2.f32 %v317_v3 }
 0x324   :  { %v511_v4 = vpop.eup %510 }
 0x325   :  { %319 = vadd.xlane.f32.xlu0 %v511_v4 }
 0x3ae   :  { %v320_v0 = vpop.xlane.xlu0 %319 }
 0x3af   :  { %512 = vlog2.f32 %v320_v0 }
 0x3bc   :  { %v513_v5 = vpop.eup %512 }
 0x3bd   :  { %v322_v6 = vmul.f32 0.6931472, %v513_v5 }
 0x3bf   :  { %v323_v7 = vsub.f32 %v316_v2, %v322_v6 }
 0x3c1   :  { %v324_v8 = vmul.f32 1.442695, %v323_v7  ;;  %327 = vst [vmem:[#allocation7 + $0x8] sm:$0xff] %v323_v7 }
 0x3c3   :  { %514 = vpow2.f32 %v324_v8 }
 0x3d0   :  { %v515_v9 = vpop.eup %514 }
 0x3d1   :  { %326 = vst [vmem:[#allocation7] sm:$0xff] %v515_v9 }
 0x3d2   :  { %567 = shalt.err (!%p564_p0)
}
 0x3d3   :  { %337 = dma.vmem_to_hbm [thread:$0]  %s335_s1, 256, %s669_s2, [#allocation4]  }
 0x3d4   :  { %580 = dma.done.wait [#allocation4], 256  }
 0x3d5   :  { %581 = vsyncadd [#allocation4], 4294967040 }
 0x3d6   :  { %341 = vsyncpa [#allocation3], 1 }
 0x3d7   :  { %342 = vsyncpa [#allocation6], 1 }
 0x3d8   :  { %343 = vsyncpa [#allocation4], 1 }

</bundles_post_ra>
